<compile_context>
chip_gen: v6e
topology: v6e:2x2x1
jax: 0.10.0
libtpu: 0.0.40
codegen_flags: <defaults>
</compile_context>

<pallas_src>
import functools

import jax
import jax.numpy as jnp
from jax.experimental import pallas as pl
from jax.experimental.pallas import tpu as pltpu

# Safe on v5e/v6e/v7x (<= physical VMEM everywhere, raises v5e's 16MiB default).
_VMEM_LIMIT = 32 * 1024 * 1024
_NEG_INF = -1e9  # finite large-negative bias (avoids -inf overflow / NaN rows)


def _pick_tm(M):
    for t in (512, 256, 128):
        if M % t == 0:
            return t
    return M


# ----------------------------------------------------------------------------
# Small matmul / layernorm kernels (tiled over rows)
# ----------------------------------------------------------------------------
def _linear_kernel(x_ref, w_ref, o_ref):
    o_ref[...] = jnp.dot(x_ref[...].astype(jnp.bfloat16), w_ref[...],
                         preferred_element_type=jnp.float32)


def linear_pallas(x, w):
    """y = x @ w  with x:[M,K] (f32), w:[K,N] (bf16)."""
    M, K = x.shape
    _, N = w.shape
    tm = _pick_tm(M)
    return pl.pallas_call(
        _linear_kernel,
        out_shape=jax.ShapeDtypeStruct((M, N), jnp.float32),
        grid=(M // tm,),
        in_specs=[pl.BlockSpec((tm, K), lambda i: (i, 0)),
                  pl.BlockSpec((K, N), lambda i: (0, 0))],
        out_specs=pl.BlockSpec((tm, N), lambda i: (i, 0)),
        compiler_params=pltpu.CompilerParams(
            dimension_semantics=("parallel",), vmem_limit_bytes=_VMEM_LIMIT),
    )(x, w)


def _layernorm(x, g, b):
    mu = jnp.mean(x, axis=-1, keepdims=True)
    var = jnp.mean((x - mu) ** 2, axis=-1, keepdims=True)
    return (x - mu) * jax.lax.rsqrt(var + 1e-5) * g + b


def _ln_kernel(x_ref, g_ref, b_ref, o_ref):
    o_ref[...] = _layernorm(x_ref[...], g_ref[...], b_ref[...])


def ln_pallas(x, gamma, beta):
    """Final LayerNorm only (used when project_out is None)."""
    M, H = x.shape
    tm = _pick_tm(M)
    return pl.pallas_call(
        _ln_kernel,
        out_shape=jax.ShapeDtypeStruct((M, H), jnp.float32),
        grid=(M // tm,),
        in_specs=[pl.BlockSpec((tm, H), lambda i: (i, 0)),
                  pl.BlockSpec((1, H), lambda i: (0, 0)),
                  pl.BlockSpec((1, H), lambda i: (0, 0))],
        out_specs=pl.BlockSpec((tm, H), lambda i: (i, 0)),
        compiler_params=pltpu.CompilerParams(
            dimension_semantics=("parallel",), vmem_limit_bytes=_VMEM_LIMIT),
    )(x, gamma, beta)


def _ln_proj_kernel(x_ref, g_ref, b_ref, w_ref, o_ref):
    xn = _layernorm(x_ref[...], g_ref[...], b_ref[...])
    o_ref[...] = jnp.dot(xn.astype(jnp.bfloat16), w_ref[...],
                         preferred_element_type=jnp.float32)


def ln_proj_pallas(x, gamma, beta, w):
    """Final LayerNorm fused with project_out.  x:[M,H] f32, w:[H,P] bf16."""
    M, H = x.shape
    _, P = w.shape
    tm = _pick_tm(M)
    return pl.pallas_call(
        _ln_proj_kernel,
        out_shape=jax.ShapeDtypeStruct((M, P), jnp.float32),
        grid=(M // tm,),
        in_specs=[pl.BlockSpec((tm, H), lambda i: (i, 0)),
                  pl.BlockSpec((1, H), lambda i: (0, 0)),
                  pl.BlockSpec((1, H), lambda i: (0, 0)),
                  pl.BlockSpec((H, P), lambda i: (0, 0))],
        out_specs=pl.BlockSpec((tm, P), lambda i: (i, 0)),
        compiler_params=pltpu.CompilerParams(
            dimension_semantics=("parallel",), vmem_limit_bytes=_VMEM_LIMIT),
    )(x, gamma, beta, w)


# ----------------------------------------------------------------------------
# Decoder-layer kernels
# ----------------------------------------------------------------------------
def _ln_qkv_kernel(h_ref, g_ref, b_ref, wqkv_ref, bqkv_ref, o_ref):
    x = h_ref[0]                                              # (S, H) f32
    xn = _layernorm(x, g_ref[...], b_ref[...])
    qkv = jnp.dot(xn.astype(jnp.bfloat16), wqkv_ref[...],
                  preferred_element_type=jnp.float32) + bqkv_ref[...]
    o_ref[0] = qkv.astype(o_ref.dtype)


def ln_qkv_pallas(h, gamma, beta, wqkv, bqkv):
    B, S, H = h.shape
    N3 = wqkv.shape[1]
    return pl.pallas_call(
        _ln_qkv_kernel,
        out_shape=jax.ShapeDtypeStruct((B, S, N3), jnp.bfloat16),
        grid=(B,),
        in_specs=[pl.BlockSpec((1, S, H), lambda b: (b, 0, 0)),
                  pl.BlockSpec((1, H), lambda b: (0, 0)),
                  pl.BlockSpec((1, H), lambda b: (0, 0)),
                  pl.BlockSpec((H, N3), lambda b: (0, 0)),
                  pl.BlockSpec((1, N3), lambda b: (0, 0))],
        out_specs=pl.BlockSpec((1, S, N3), lambda b: (b, 0, 0)),
        compiler_params=pltpu.CompilerParams(
            dimension_semantics=("parallel",), vmem_limit_bytes=_VMEM_LIMIT),
    )(h, gamma, beta, wqkv, bqkv)


def _attention_kernel(q_ref, k_ref, v_ref, m_ref, o_ref, *, scale):
    # q/k/v: (nh, S, hd) bf16, m: (1, S) float (1=valid key, 0=pad)
    q = (q_ref[0].astype(jnp.float32) * scale).astype(jnp.bfloat16)
    k = k_ref[0]
    v = v_ref[0]
    nh, S, hd = q.shape

    # additive bias built in-kernel (no (B,S,S) mask DMA), shared by all heads
    row = jax.lax.broadcasted_iota(jnp.int32, (S, S), 0)
    col = jax.lax.broadcasted_iota(jnp.int32, (S, S), 1)
    keep = jnp.logical_and(row >= col, m_ref[0] > 0.5)        # (S, S)
    bias = jnp.where(keep, 0.0, _NEG_INF).astype(jnp.float32)

    s = jnp.einsum('nqd,nkd->nqk', q, k,
                   preferred_element_type=jnp.float32)        # (nh, S, S)
    s = s + bias[None]
    s = s - jnp.max(s, axis=-1, keepdims=True)
    p = jnp.exp(s)
    p = p * pl.reciprocal(jnp.sum(p, axis=-1, keepdims=True), approx=True)
    ctx = jnp.einsum('nqk,nkd->nqd', p.astype(jnp.bfloat16), v,
                     preferred_element_type=jnp.float32)      # (nh, S, hd)
    o_ref[0] = ctx.astype(o_ref.dtype)


def attention_pallas(q, k, v, key_mask, head_dim):
    """q/k/v: (B, nh, S, hd) bf16; key_mask: (B, 1, S) float32."""
    B, nh, S, hd = q.shape
    kernel = functools.partial(_attention_kernel, scale=head_dim ** -0.5)
    qkv_spec = pl.BlockSpec((1, nh, S, hd), lambda b: (b, 0, 0, 0))
    # TODO(synk): for long sequences add a query-tile grid axis with
    # flash-style online softmax; at demo S the full (nh,S,S) scores fit VMEM.
    return pl.pallas_call(
        kernel,
        out_shape=jax.ShapeDtypeStruct((B, nh, S, hd), jnp.bfloat16),
        grid=(B,),
        in_specs=[qkv_spec, qkv_spec, qkv_spec,
                  pl.BlockSpec((1, 1, S), lambda b: (b, 0, 0))],
        out_specs=pl.BlockSpec((1, nh, S, hd), lambda b: (b, 0, 0, 0)),
        compiler_params=pltpu.CompilerParams(
            dimension_semantics=("parallel",), vmem_limit_bytes=_VMEM_LIMIT),
    )(q, k, v, key_mask)


def _attn_out_ffn_kernel(x_ref, ctx_ref, wo, bo, ln2g, ln2b, w1, b1, w2, b2,
                         o_ref):
    x = x_ref[0]                                              # (S, H) f32
    ctx = ctx_ref[0]                                          # (S, H) bf16
    attn = jnp.dot(ctx, wo[...], preferred_element_type=jnp.float32) + bo[...]
    h1 = x + attn
    hn = _layernorm(h1, ln2g[...], ln2b[...])
    f = jnp.dot(hn.astype(jnp.bfloat16), w1[...],
                preferred_element_type=jnp.float32) + b1[...]
    f = jnp.maximum(f, 0.0)                                   # relu
    f = jnp.dot(f.astype(jnp.bfloat16), w2[...],
                preferred_element_type=jnp.float32) + b2[...]
    o_ref[0] = h1 + f


def attn_out_ffn_pallas(hidden, ctx, p):
    B, S, H = hidden.shape
    F = p['w1'].shape[1]
    full = lambda shape: pl.BlockSpec(shape, lambda b: (0,) * len(shape))
    # TODO(synk): tile the FFN matmuls over F with an f32 accumulator for
    # real OPT sizes (keeps weights out of a single resident VMEM block).
    return pl.pallas_call(
        _attn_out_ffn_kernel,
        out_shape=jax.ShapeDtypeStruct((B, S, H), jnp.float32),
        grid=(B,),
        in_specs=[pl.BlockSpec((1, S, H), lambda b: (b, 0, 0)),
                  pl.BlockSpec((1, S, H), lambda b: (b, 0, 0)),
                  full((H, H)), full((1, H)),
                  full((1, H)), full((1, H)),
                  full((H, F)), full((1, F)),
                  full((F, H)), full((1, H))],
        out_specs=pl.BlockSpec((1, S, H), lambda b: (b, 0, 0)),
        compiler_params=pltpu.CompilerParams(
            dimension_semantics=("parallel",), vmem_limit_bytes=_VMEM_LIMIT),
    )(hidden, ctx, p['wo'], p['bo'], p['ln2_g'], p['ln2_b'],
      p['w1'], p['b1'], p['w2'], p['b2'])


def opt_layer_forward(hidden, key_mask, p, head_dim):
    """One OPT decoder layer.  hidden:[B,S,H] f32, key_mask:[B,1,S] f32."""
    B, S, H = hidden.shape
    nh = H // head_dim

    qkv = ln_qkv_pallas(hidden, p['ln1_g'], p['ln1_b'],
                        p['wqkv'], p['bqkv'])                 # (B,S,3H) bf16
    q, k, v = jnp.split(qkv, 3, axis=-1)

    def to_heads(t):  # (B,S,H) -> (B,nh,S,hd), plain-JAX layout op
        return t.reshape(B, S, nh, head_dim).transpose(0, 2, 1, 3)

    ctx = attention_pallas(to_heads(q), to_heads(k), to_heads(v),
                           key_mask, head_dim)                # (B,nh,S,hd)
    ctx = ctx.transpose(0, 2, 1, 3).reshape(B, S, H)
    return attn_out_ffn_pallas(hidden, ctx, p)


# ----------------------------------------------------------------------------
# Parameter init (deterministic, synthetic)
# ----------------------------------------------------------------------------
def _normal(key, shape, scale=0.02):
    return scale * jax.random.normal(key, shape, dtype=jnp.float32)


def init_layer_params(key, H, head_dim, F):
    ks = jax.random.split(key, 6)
    wq, wk, wv = (_normal(ks[i], (H, H)) for i in range(3))
    return {
        'ln1_g': jnp.ones((1, H), jnp.float32),
        'ln1_b': jnp.zeros((1, H), jnp.float32),
        'wqkv': jnp.concatenate([wq, wk, wv], axis=1).astype(jnp.bfloat16),
        'bqkv': jnp.zeros((1, 3 * H), jnp.float32),
        'wo': _normal(ks[3], (H, H)).astype(jnp.bfloat16),
        'bo': jnp.zeros((1, H), jnp.float32),
        'ln2_g': jnp.ones((1, H), jnp.float32),
        'ln2_b': jnp.zeros((1, H), jnp.float32),
        'w1': _normal(ks[4], (H, F)).astype(jnp.bfloat16),
        'b1': jnp.zeros((1, F), jnp.float32),
        'w2': _normal(ks[5], (F, H)).astype(jnp.bfloat16),
        'b2': jnp.zeros((1, H), jnp.float32),
    }


def init_decoder_params(key, cfg):
    keys = jax.random.split(key, 16)
    params = {}
    tok = _normal(keys[0], (cfg['vocab_size'], cfg['word_embed_proj_dim']))
    tok = tok.at[cfg['pad_token_id']].set(0.0)       # nn.Embedding padding_idx
    params['embed_tokens'] = tok
    # OPTLearnedPositionalEmbedding: table size max_pos + 2 (offset=2)
    params['embed_positions'] = _normal(
        keys[1], (cfg['max_position_embeddings'] + 2, cfg['hidden_size'][0]))
    params['project_in'] = (
        _normal(keys[2], (cfg['word_embed_proj_dim'],
                          cfg['hidden_size'][0])).astype(jnp.bfloat16)
        if cfg['word_embed_proj_dim'] != cfg['hidden_size'][0] else None)
    params['project_out'] = (
        _normal(keys[3], (cfg['hidden_size'][-1],
                          cfg['word_embed_proj_dim'])).astype(jnp.bfloat16)
        if cfg['word_embed_proj_dim'] != cfg['hidden_size'][-1] else None)
    params['final_ln_g'] = jnp.ones((1, cfg['hidden_size'][-1]), jnp.float32)
    params['final_ln_b'] = jnp.zeros((1, cfg['hidden_size'][-1]), jnp.float32)
    # blocks (weight_sharing=False: distinct params per layer)
    blocks = []
    lkeys = jax.random.split(keys[4], sum(cfg['layers_per_block']))
    ki = 0
    for b in range(cfg['num_blocks']):
        layers = []
        for _ in range(cfg['layers_per_block'][b]):
            layers.append(init_layer_params(
                lkeys[ki], cfg['hidden_size'][b], cfg['head_dim'],
                cfg['ffn_dim'][b]))
            ki += 1
        blocks.append(layers)
    params['blocks'] = blocks
    # block_proj (Identity unless hidden sizes differ between blocks)
    block_proj = []
    for b in range(cfg['num_blocks']):
        if (b < cfg['num_blocks'] - 1
                and cfg['hidden_size'][b] != cfg['hidden_size'][b + 1]):
            block_proj.append(_normal(
                keys[5 + b], (cfg['hidden_size'][b],
                              cfg['hidden_size'][b + 1])).astype(jnp.bfloat16))
        else:
            block_proj.append(None)
    params['block_proj'] = block_proj
    return params


# ----------------------------------------------------------------------------
# Decoder forward (glue around the Pallas kernels)
# ----------------------------------------------------------------------------
def opt_decoder_forward(params, cfg, input_ids, attention_mask=None):
    B, S = input_ids.shape
    # TODO(synk): embedding gathers are done with plain-JAX jnp.take.
    inputs_embeds = jnp.take(params['embed_tokens'], input_ids, axis=0)

    if attention_mask is None:
        attention_mask = jnp.ones((B, S), dtype=jnp.int32)

    # OPTLearnedPositionalEmbedding: positions from cumsum of mask, offset 2
    m = attention_mask.astype(jnp.int32)
    positions = jnp.cumsum(m, axis=1) * m - 1
    pos_embeds = jnp.take(params['embed_positions'], positions + 2, axis=0)

    # Only the (B,1,S) key-padding mask is passed; causal+padding bias is
    # rebuilt inside the attention kernel (no (B,S,S) f32 mask in HBM).
    key_mask = attention_mask.astype(jnp.float32).reshape(B, 1, S)

    if params['project_in'] is not None:
        x = linear_pallas(inputs_embeds.reshape(B * S, -1),
                          params['project_in']).reshape(B, S, -1)
    else:
        x = inputs_embeds
    hidden = x + pos_embeds

    for b, layers in enumerate(params['blocks']):
        for layer_p in layers:
            hidden = opt_layer_forward(hidden, key_mask, layer_p,
                                       cfg['head_dim'])
        if params['block_proj'][b] is not None:
            hidden = linear_pallas(hidden.reshape(B * S, -1),
                                   params['block_proj'][b]).reshape(B, S, -1)

    # final LayerNorm (+ project_out fused when present; LN-only otherwise)
    if params['project_out'] is not None:
        out = ln_proj_pallas(hidden.reshape(B * S, -1),
                             params['final_ln_g'], params['final_ln_b'],
                             params['project_out'])
    else:
        out = ln_pallas(hidden.reshape(B * S, -1),
                        params['final_ln_g'], params['final_ln_b'])
    return out.reshape(B, S, -1)


# TODO(synk): weight-sharing variant (OPTBlockWS) just reuses one layer's
# params num_layers times; not exercised since config.weight_sharing=False.


# ----------------------------------------------------------------------------
# Demo
# ----------------------------------------------------------------------------
if __name__ == "__main__":
    cfg = dict(
        vocab_size=100,
        word_embed_proj_dim=16,
        hidden_size=[32, 32],
        head_dim=8,
        ffn_dim=[64, 64],
        num_blocks=2,
        layers_per_block=[2, 1],
        max_position_embeddings=32,
        pad_token_id=1,
        dropout=0.0,
        layerdrop=0.0,
        attention_dropout=0.0,
        activation_function='relu',
        weight_sharing=False,
    )

    key = jax.random.PRNGKey(0)
    pkey, ikey = jax.random.split(key)
    params = init_decoder_params(pkey, cfg)

    B, S = 2, 8
    input_ids = jax.random.randint(ikey, (B, S), 0, cfg['vocab_size'],
                                   dtype=jnp.int32)
    attention_mask = jnp.ones((B, S), dtype=jnp.int32).at[1, -1].set(0)

    out = opt_decoder_forward(params, cfg, input_ids, attention_mask)
    out = jax.block_until_ready(out)

    assert out.shape == (B, S, cfg['word_embed_proj_dim']), out.shape
    assert bool(jnp.all(jnp.isfinite(out)))
    print("KERNEL_OK")
</pallas_src>

<mosaic_0001>
module attributes {stable_mosaic.version = 11 : i64} {
  func.func @_linear_kernel(%arg0: i32, %arg1: memref<16x16xf32, #tpu.memory_space<vmem>>, %arg2: memref<16x32xbf16, #tpu.memory_space<vmem>>, %arg3: memref<16x32xf32, #tpu.memory_space<vmem>>) attributes {dimension_semantics = [#tpu.dimension_semantics<parallel>], iteration_bounds = array<i64: 1>, scalar_prefetch = 0 : i64, scratch_operands = 0 : i64, tpu.core_type = #tpu.core_type<tc>, window_params = [{transform_indices = @transform_0, window_bounds = array<i64: 16, 16>}, {pipeline_mode = #tpu.pipeline_mode<synchronous>, transform_indices = @transform_1, window_bounds = array<i64: 16, 32>}, {transform_indices = @transform_2, window_bounds = array<i64: 16, 32>}]} {
    %c0 = arith.constant 0 : index
    %c0_0 = arith.constant 0 : index
    %0 = vector.load %arg1[%c0, %c0_0] : memref<16x16xf32, #tpu.memory_space<vmem>>, vector<16x16xf32>
    %1 = arith.truncf %0 : vector<16x16xf32> to vector<16x16xbf16>
    %c0_1 = arith.constant 0 : index
    %c0_2 = arith.constant 0 : index
    %2 = vector.load %arg2[%c0_1, %c0_2] : memref<16x32xbf16, #tpu.memory_space<vmem>>, vector<16x32xbf16>
    %cst = arith.constant dense<0.000000e+00> : vector<16x32xf32>
    %3 = tpu.matmul %1, %2, %cst {dimension_numbers = #tpu.dot_dimension_numbers<[1], [0], [0], [1], [0, 0, 1, 1], [], []>} : vector<16x16xbf16>, vector<16x32xbf16>, vector<16x32xf32> -> vector<16x32xf32>
    %c0_3 = arith.constant 0 : index
    %c0_4 = arith.constant 0 : index
    %4 = vector.load %arg3[%c0_3, %c0_4] : memref<16x32xf32, #tpu.memory_space<vmem>>, vector<16x32xf32>
    tpu.vector_store %arg3[%c0_3, %c0_4], %3 {strides = array<i32>} : memref<16x32xf32, #tpu.memory_space<vmem>>, vector<16x32xf32>,
    return
  }
  func.func @transform_0(%arg0: i32) -> (i32, i32) {
    %c0_i32 = arith.constant 0 : i32
    %c0_i32_0 = arith.constant 0 : i32
    return %arg0, %c0_i32 : i32, i32
  }
  func.func @transform_1(%arg0: i32) -> (i32, i32) {
    %c0_i32 = arith.constant 0 : i32
    %c0_i32_0 = arith.constant 0 : i32
    %c0_i32_1 = arith.constant 0 : i32
    return %c0_i32, %c0_i32_0 : i32, i32
  }
  func.func @transform_2(%arg0: i32) -> (i32, i32) {
    %c0_i32 = arith.constant 0 : i32
    %c0_i32_0 = arith.constant 0 : i32
    return %arg0, %c0_i32 : i32, i32
  }
}

</mosaic_0001>

<bundles_post_ra>
// kernel: tpu_custom_call.1
= control target key start
LH: loop header
LB: loop body
LE: loop exit
PB: predicated region body
PF: predicated region fallthrough
CT: control target
= control target key end

     0   :  { %7 = vsyncpa [#allocation3], 0  ;;  %s243_s0 = inlined_call_operand.hbm [shape: f32[16,16], index: 0, kind: input, shape index: {}]   ;;  %s244_s1 = inlined_call_operand.hbm [shape: bf16[16,32], index: 1, kind: input, shape index: {}]   ;;  %s245_s2 = inlined_call_operand.hbm [shape: f32[16,32], index: 2, kind: output, shape index: {}]  }
   0x1   :  { %8 = vsyncpa [#allocation6], 0 }
   0x2   :  { %9 = vsyncpa [#allocation4], 0  ;;  %s204_s9 = smov [#allocation2]  }
   0x3   :  { %s15_s10 = sshll.u32 %s204_s9, 4  ;;  %s16_s10 = int_to_ptr.vmem [resolvable:$true] %s15_s10 }
   0x4   :  { %s146_s11 = scalar_lea.vmem %s16_s10, 256  ;;  %p151_p1 = scmp.lt.s32.totalorder %s16_s10, %s16_s10 }
   0x5   :  { %p147_p0 = scmp.ne.s32.totalorder %s16_s10, %s146_s11  ;;  %p152_p2 = scmp.lt.s32.totalorder %s146_s11, %s146_s11 }
   0x7   :  { %p153_p3 = por %p152_p2, %p151_p1 }
   0x9   :  { %p154_p4 = pnand %p153_p3, %p147_p0 }
   0xb   :  { %157 = shalt.err (!%p154_p4)
}
   0xc   :  { %s205_s12 = smov 128   ;;  %s206_s13 = smov 8  }
   0xd   :  { %21 = dma.hbm_to_vmem [thread:$0]  %s243_s0, 256, %s16_s10, [#allocation3], %s205_s12, %s205_s12, %s206_s13  }
   0xe   :  { %s207_s16 = smov [#allocation5]  }
   0xf   :  { %s27_s17 = sshll.u32 %s207_s16, 4  ;;  %s28_s17 = int_to_ptr.vmem [resolvable:$true] %s27_s17 }
  0x10   :  { %s166_s18 = scalar_lea.vmem %s28_s17, 128  ;;  %p171_p6 = scmp.lt.s32.totalorder %s28_s17, %s28_s17 }
  0x11   :  { %p167_p5 = scmp.ne.s32.totalorder %s28_s17, %s166_s18  ;;  %p172_p7 = scmp.lt.s32.totalorder %s166_s18, %s166_s18 }
  0x13   :  { %p173_p8 = por %p172_p7, %p171_p6 }
  0x15   :  { %p174_p9 = pnand %p173_p8, %p167_p5 }
  0x17   :  { %177 = shalt.err (!%p174_p9)
}
  0x18   :  { %s208_s19 = smov 64   ;;  %s209_s20 = smov 4  }
  0x19   :  { %33 = dma.hbm_to_vmem [thread:$0]  %s244_s1, 128, %s28_s17, [#allocation6], %s208_s19, %s208_s19, %s209_s20  }
  0x1a   :  { %198 = dma.done.wait [#allocation3], 256  }
  0x1b   :  { %199 = vsyncadd [#allocation3], 4294967040 }
  0x1c   :  { %200 = dma.done.wait [#allocation6], 128  }
  0x1d   :  { %201 = vsyncadd [#allocation6], 4294967168  ;;  %v210_v0 = vmov 0.0   ;;  %vm211_vm0 = vmmov 0   ;;  %v137_v1 = vld [vmem:[#allocation5] sm:$0xff]   ;;  %v41_v2 = vld [vmem:[#allocation2] sm:$0xff] }
  0x1e   :  { %122 = vmatprep.subr.bf16.mxu0 %v210_v0  ;;  %124 = vmatprep.mubr.msk.bf16.mxu0 %vm211_vm0, %v210_v0  ;;  %v42_v3 = vld [vmem:[#allocation2 + $0x8] sm:$0xff]  ;;  %vm52_vm1 = vcmask 130048   ;;  %vm97_vm2 = vcmask 261120   ;;  %s212_s0 = smov [#allocation7]  }
  0x1f   :  { %123 = vmatpush3.bf16.msra.mxu0 %v137_v1  ;;  %v43_v4 = vpack.c.bf16 %v42_v3, %v41_v2  ;;  %s105_s23 = sshll.u32 %s212_s0, 4  ;;  %s106_s23 = int_to_ptr.vmem [resolvable:$true] %s105_s23 }
  0x20   :  { %s178_s1 = scalar_lea.vmem %s106_s23, 256  ;;  %p183_p11 = scmp.lt.s32.totalorder %s106_s23, %s106_s23 }
  0x21   :  { %p179_p10 = scmp.ne.s32.totalorder %s106_s23, %s178_s1  ;;  %p184_p12 = scmp.lt.s32.totalorder %s178_s1, %s178_s1 }
  0x22   :  { %125 = vmatmul.mubr.msk.bf16.vlgmr.msra.gmra.mxu0 %vm52_vm1, %v43_v4 }
  0x23   :  { %p185_p13 = por %p184_p12, %p183_p11 }
  0x25   :  { %p186_p0 = pnand %p185_p13, %p179_p10 }
  0xe2   :  { %v90_v5 = vpop.f32.mrf.mxu0 }
  0xe3   :  { %98 = vst.msk [vmem:[#allocation7] sm:$0xff] %vm97_vm2, %v90_v5 }
  0xe4   :  { %v126_v6 = vpop.f32.mrf.mxu0 }
  0xe6   :  { %v93_v7 = vpop.f32.mrf.mxu0 }
  0xe7   :  { %99 = vst.msk [vmem:[#allocation7 + $0x8] sm:$0xff] %vm97_vm2, %v93_v7 }
  0xe8   :  { %v127_v8 = vpop.f32.mrf.mxu0 }
  0xe9   :  { %189 = shalt.err (!%p186_p0)
}
  0xea   :  { %111 = dma.vmem_to_hbm [thread:$0]  %s106_s23, 256, %s245_s2, [#allocation4], %s205_s12, %s205_s12, %s206_s13  }
  0xeb   :  { %202 = dma.done.wait [#allocation4], 256  }
  0xec   :  { %203 = vsyncadd [#allocation4], 4294967040 }
  0xed   :  { %115 = vsyncpa [#allocation3], 1 }
  0xee   :  { %116 = vsyncpa [#allocation6], 1 }
  0xef   :  { %117 = vsyncpa [#allocation4], 1 }

</bundles_post_ra>
